<compile_context>
chip_gen: v7x
topology: tpu7x:2x2x1
jax: 0.10.0
libtpu: 0.0.40
codegen_flags: <defaults>
</compile_context>

<pallas_src>
import functools

import jax
import jax.numpy as jnp
from jax.experimental import pallas as pl
from jax.experimental.pallas import tpu as pltpu


def _pool_project_kernel(x_ref, w_ref, b_ref, o_ref, acc_ref, *, inv_seq_len):
    """Pool-then-project: accumulate token sum over S, one matmul at the end.

    x_ref  : (B_tile, S_tile, D)  token embeddings (native dtype)
    w_ref  : (D, H_pad)           projection weight
    b_ref  : (1, H_pad)           projection bias (f32)
    o_ref  : (B_tile, H_pad)      pooled embeddings (f32)
    acc_ref: (B_tile, D) f32 VMEM scratch -- running token sum over S.
    """
    s = pl.program_id(1)

    @pl.when(s == 0)
    def _():
        acc_ref[...] = jnp.zeros_like(acc_ref)

    # Accumulate the token sum for this S tile in f32.
    acc_ref[...] += jnp.sum(x_ref[...].astype(jnp.float32), axis=1)

    @pl.when(s == pl.num_programs(1) - 1)
    def _():
        pooled = (acc_ref[...] * inv_seq_len).astype(w_ref.dtype)   # (B_tile, D)
        out = jnp.dot(pooled, w_ref[...], preferred_element_type=jnp.float32)
        o_ref[...] = (out + b_ref[...].astype(jnp.float32)).astype(o_ref.dtype)


def encode_and_pool(x, w, b, *, s_tile=None, b_tile=None):
    """x: [B, S, D], w: [D, H], b: [H] -> mean_S(x @ w + b): [B, H] float32."""
    B, S, D = x.shape
    D_w, H = w.shape
    assert D_w == D

    # Lane-dense output: pad H up to a multiple of 128 (zero cols sliced off).
    H_pad = ((H + 127) // 128) * 128
    if H_pad != H:
        w = jnp.pad(w, ((0, 0), (0, H_pad - H)))
        b = jnp.pad(b, ((0, H_pad - H),))

    # Batch tiling (parallel axis).
    if b_tile is None:
        b_tile = B if B <= 8 else 8

    # Sequence tiling (reduction axis, kept last in the grid).  Zero-padding S
    # does not change the token sum; the mean divides by the true S.
    if s_tile is None:
        s_tile = S if S <= 512 else 512

    x_isz = jnp.dtype(x.dtype).itemsize
    w_isz = jnp.dtype(w.dtype).itemsize
    vmem_cap = 48 << 20  # below v7x's 64 MiB physical VMEM, with headroom

    def _vmem_need(st):
        return (2 * (b_tile * st * D * x_isz          # x block, double-buffered
                     + D * H_pad * w_isz              # weight block
                     + H_pad * 4                      # bias block
                     + b_tile * H_pad * 4)            # output block
                + b_tile * D * 4)                     # f32 accumulator scratch

    # Shrink the sequence tile if the double-buffered budget would overflow.
    while _vmem_need(s_tile) > vmem_cap and s_tile > 8:
        s_tile = max(8, s_tile // 2)

    S_pad = ((S + s_tile - 1) // s_tile) * s_tile
    if S_pad != S:
        x = jnp.pad(x, ((0, 0), (0, S_pad - S), (0, 0)))
    num_s = S_pad // s_tile

    B_pad = ((B + b_tile - 1) // b_tile) * b_tile
    if B_pad != B:
        x = jnp.pad(x, ((0, B_pad - B), (0, 0), (0, 0)))
    num_b = B_pad // b_tile

    b2 = b.reshape(1, H_pad).astype(jnp.float32)

    vmem_limit = int(min(max(_vmem_need(s_tile) + (2 << 20), 8 << 20), vmem_cap))

    kernel = functools.partial(_pool_project_kernel, inv_seq_len=1.0 / S)

    out = pl.pallas_call(
        kernel,
        out_shape=jax.ShapeDtypeStruct((B_pad, H_pad), jnp.float32),
        grid=(num_b, num_s),
        in_specs=[
            pl.BlockSpec((b_tile, s_tile, D), lambda i, s: (i, s, 0)),
            pl.BlockSpec((D, H_pad), lambda i, s: (0, 0)),
            pl.BlockSpec((1, H_pad), lambda i, s: (0, 0)),
        ],
        out_specs=pl.BlockSpec((b_tile, H_pad), lambda i, s: (i, 0)),
        scratch_shapes=[pltpu.VMEM((b_tile, D), jnp.float32)],
        compiler_params=pltpu.CompilerParams(
            dimension_semantics=("parallel", "arbitrary"),
            vmem_limit_bytes=vmem_limit,
        ),
    )(x, w, b2)

    return out[:B, :H]


@jax.jit
def _protclip_forward(batch, plm_w, plm_b, llm_w, llm_b):
    # PLMEncoder(x, 'per_prot'): last_hidden_state.mean(axis=1).flatten()
    prot_embed = encode_and_pool(batch["seq"], plm_w, plm_b).reshape(-1)
    # LLMEncoder(x, sentence_level=True): hidden_states[-1].mean(dim=1) -> f32
    txt_embed = encode_and_pool(batch["text"], llm_w, llm_b)
    return prot_embed, txt_embed


class ProtCLIPPallas:
    """JAX/Pallas equivalent of ProtCLIP.forward (returns (prot_embed, txt_embed))."""

    def __init__(self, plm_dim, plm_embed, llm_dim, llm_embed, key):
        k1, k2, k3, k4 = jax.random.split(key, 4)
        # Deterministic synthetic parameters (stand-ins for frozen encoders).
        self.plm_w = jax.random.normal(k1, (plm_dim, plm_embed), jnp.float32) * 0.02
        self.plm_b = jax.random.normal(k2, (plm_embed,), jnp.float32) * 0.02
        self.llm_w = jax.random.normal(k3, (llm_dim, llm_embed), jnp.float32) * 0.02
        self.llm_b = jax.random.normal(k4, (llm_embed,), jnp.float32) * 0.02

    def __call__(self, batch):
        return _protclip_forward(batch, self.plm_w, self.plm_b,
                                 self.llm_w, self.llm_b)


if __name__ == "__main__":
    key = jax.random.PRNGKey(0)
    k_model, k_seq, k_txt = jax.random.split(key, 3)

    # Small shapes: batch=2, protein seq len=8, protein hidden=32,
    #               text seq len=8, text hidden=32, embed dims=32.
    B, S_P, D_P, H_P = 2, 8, 32, 32
    S_T, D_T, H_T = 8, 32, 32

    batch = {
        "seq": jax.random.normal(k_seq, (B, S_P, D_P), jnp.float32),
        "text": jax.random.normal(k_txt, (B, S_T, D_T), jnp.float32),
    }

    model = ProtCLIPPallas(D_P, H_P, D_T, H_T, k_model)
    prot_embed, txt_embed = model(batch)
    jax.block_until_ready((prot_embed, txt_embed))

    # Plain-JAX f32 reference of the same semantics.  The kernel computes
    # entirely in f32 (f32 inputs, f32 accumulation, f32 matmul), so the
    # tolerance can be tight.
    ref_prot = (batch["seq"] @ model.plm_w + model.plm_b).mean(axis=1).reshape(-1)
    ref_txt = (batch["text"] @ model.llm_w + model.llm_b).mean(axis=1)
    assert prot_embed.shape == (B * H_P,)
    assert txt_embed.shape == (B, H_T)
    assert jnp.allclose(prot_embed, ref_prot, atol=1e-4, rtol=1e-4), "prot mismatch"
    assert jnp.allclose(txt_embed, ref_txt, atol=1e-4, rtol=1e-4), "txt mismatch"

    print("KERNEL_OK")
</pallas_src>

<mosaic_0001>
module attributes {stable_mosaic.version = 11 : i64} {
  func.func @_pool_project_kernel(%arg0: i32, %arg1: i32, %arg2: memref<2x8x32xf32, #tpu.memory_space<vmem>>, %arg3: memref<32x128xf32, #tpu.memory_space<vmem>>, %arg4: memref<1x128xf32, #tpu.memory_space<vmem>>, %arg5: memref<2x128xf32, #tpu.memory_space<vmem>>, %arg6: memref<2x32xf32, #tpu.memory_space<vmem>>) attributes {dimension_semantics = [#tpu.dimension_semantics<parallel>, #tpu.dimension_semantics<arbitrary>], iteration_bounds = array<i64: 1, 1>, scalar_prefetch = 0 : i64, scratch_operands = 1 : i64, tpu.core_type = #tpu.core_type<tc>, window_params = [{transform_indices = @transform_0, window_bounds = array<i64: 2, 8, 32>}, {pipeline_mode = #tpu.pipeline_mode<synchronous>, transform_indices = @transform_1, window_bounds = array<i64: 32, 128>}, {pipeline_mode = #tpu.pipeline_mode<synchronous>, transform_indices = @transform_2, window_bounds = array<i64: 1, 128>}, {transform_indices = @transform_3, window_bounds = array<i64: 2, 128>}]} {
    %c0_i32 = arith.constant 0 : i32
    %0 = arith.cmpi eq, %arg1, %c0_i32 : i32
    %1 = arith.extui %0 : i1 to i32
    %c0_i32_0 = arith.constant 0 : i32
    %2 = arith.cmpi ne, %1, %c0_i32_0 : i32
    scf.if %2 {
      %cst_9 = arith.constant 0.000000e+00 : f32
      %11 = vector.broadcast %cst_9 : f32 to vector<2x32xf32>
      %c0_10 = arith.constant 0 : index
      %c0_11 = arith.constant 0 : index
      %12 = vector.load %arg6[%c0_10, %c0_11] : memref<2x32xf32, #tpu.memory_space<vmem>>, vector<2x32xf32>
      tpu.vector_store %arg6[%c0_10, %c0_11], %11 {strides = array<i32>} : memref<2x32xf32, #tpu.memory_space<vmem>>, vector<2x32xf32>,
    } else {
    }
    %c0 = arith.constant 0 : index
    %c0_1 = arith.constant 0 : index
    %3 = vector.load %arg6[%c0, %c0_1] : memref<2x32xf32, #tpu.memory_space<vmem>>, vector<2x32xf32>
    %c0_2 = arith.constant 0 : index
    %c0_3 = arith.constant 0 : index
    %c0_4 = arith.constant 0 : index
    %4 = vector.load %arg2[%c0_2, %c0_3, %c0_4] : memref<2x8x32xf32, #tpu.memory_space<vmem>>, vector<2x8x32xf32>
    %cst = arith.constant dense<0.000000e+00> : vector<2x32xf32>
    %5 = vector.multi_reduction <add>, %4, %cst [1] : vector<2x8x32xf32> to vector<2x32xf32>
    %6 = arith.addf %3, %5 : vector<2x32xf32>
    %c0_5 = arith.constant 0 : index
    %c0_6 = arith.constant 0 : index
    %7 = vector.load %arg6[%c0_5, %c0_6] : memref<2x32xf32, #tpu.memory_space<vmem>>, vector<2x32xf32>
    tpu.vector_store %arg6[%c0_5, %c0_6], %6 {strides = array<i32>} : memref<2x32xf32, #tpu.memory_space<vmem>>, vector<2x32xf32>,
    %c0_i32_7 = arith.constant 0 : i32
    %8 = arith.cmpi eq, %arg1, %c0_i32_7 : i32
    %9 = arith.extui %8 : i1 to i32
    %c0_i32_8 = arith.constant 0 : i32
    %10 = arith.cmpi ne, %9, %c0_i32_8 : i32
    scf.if %10 {
      %c0_9 = arith.constant 0 : index
      %c0_10 = arith.constant 0 : index
      %11 = vector.load %arg6[%c0_9, %c0_10] : memref<2x32xf32, #tpu.memory_space<vmem>>, vector<2x32xf32>
      %cst_11 = arith.constant 1.250000e-01 : f32
      %12 = vector.broadcast %cst_11 : f32 to vector<2x32xf32>
      %13 = arith.mulf %11, %12 : vector<2x32xf32>
      %c0_12 = arith.constant 0 : index
      %c0_13 = arith.constant 0 : index
      %14 = vector.load %arg3[%c0_12, %c0_13] : memref<32x128xf32, #tpu.memory_space<vmem>>, vector<32x128xf32>
      %cst_14 = arith.constant dense<0.000000e+00> : vector<2x128xf32>
      %15 = tpu.matmul %13, %14, %cst_14 {dimension_numbers = #tpu.dot_dimension_numbers<[1], [0], [0], [1], [0, 0, 1, 1], [], []>} : vector<2x32xf32>, vector<32x128xf32>, vector<2x128xf32> -> vector<2x128xf32>
      %c0_15 = arith.constant 0 : index
      %c0_16 = arith.constant 0 : index
      %16 = vector.load %arg4[%c0_15, %c0_16] : memref<1x128xf32, #tpu.memory_space<vmem>>, vector<1x128xf32>
      %17 = vector.broadcast %16 : vector<1x128xf32> to vector<2x128xf32>
      %18 = arith.addf %15, %17 : vector<2x128xf32>
      %c0_17 = arith.constant 0 : index
      %c0_18 = arith.constant 0 : index
      %19 = vector.load %arg5[%c0_17, %c0_18] : memref<2x128xf32, #tpu.memory_space<vmem>>, vector<2x128xf32>
      tpu.vector_store %arg5[%c0_17, %c0_18], %18 {strides = array<i32>} : memref<2x128xf32, #tpu.memory_space<vmem>>, vector<2x128xf32>,
    } else {
    }
    return
  }
  func.func @transform_0(%arg0: i32, %arg1: i32) -> (i32, i32, i32) {
    %c0_i32 = arith.constant 0 : i32
    %c0_i32_0 = arith.constant 0 : i32
    return %arg0, %arg1, %c0_i32 : i32, i32, i32
  }
  func.func @transform_1(%arg0: i32, %arg1: i32) -> (i32, i32) {
    %c0_i32 = arith.constant 0 : i32
    %c0_i32_0 = arith.constant 0 : i32
    %c0_i32_1 = arith.constant 0 : i32
    return %c0_i32, %c0_i32_0 : i32, i32
  }
  func.func @transform_2(%arg0: i32, %arg1: i32) -> (i32, i32) {
    %c0_i32 = arith.constant 0 : i32
    %c0_i32_0 = arith.constant 0 : i32
    %c0_i32_1 = arith.constant 0 : i32
    return %c0_i32, %c0_i32_0 : i32, i32
  }
  func.func @transform_3(%arg0: i32, %arg1: i32) -> (i32, i32) {
    %c0_i32 = arith.constant 0 : i32
    %c0_i32_0 = arith.constant 0 : i32
    return %arg0, %c0_i32 : i32, i32
  }
}

module attributes {stable_mosaic.version = 11 : i64} {
  func.func @_pool_project_kernel(%arg0: i32, %arg1: i32, %arg2: memref<2x8x32xf32, #tpu.memory_space<vmem>>, %arg3: memref<32x128xf32, #tpu.memory_space<vmem>>, %arg4: memref<1x128xf32, #tpu.memory_space<vmem>>, %arg5: memref<2x128xf32, #tpu.memory_space<vmem>>, %arg6: memref<2x32xf32, #tpu.memory_space<vmem>>) attributes {dimension_semantics = [#tpu.dimension_semantics<parallel>, #tpu.dimension_semantics<arbitrary>], iteration_bounds = array<i64: 1, 1>, scalar_prefetch = 0 : i64, scratch_operands = 1 : i64, tpu.core_type = #tpu.core_type<tc>, window_params = [{transform_indices = @transform_0, window_bounds = array<i64: 2, 8, 32>}, {pipeline_mode = #tpu.pipeline_mode<synchronous>, transform_indices = @transform_1, window_bounds = array<i64: 32, 128>}, {pipeline_mode = #tpu.pipeline_mode<synchronous>, transform_indices = @transform_2, window_bounds = array<i64: 1, 128>}, {transform_indices = @transform_3, window_bounds = array<i64: 2, 128>}]} {
    %c0_i32 = arith.constant 0 : i32
    %0 = arith.cmpi eq, %arg1, %c0_i32 : i32
    %1 = arith.extui %0 : i1 to i32
    %c0_i32_0 = arith.constant 0 : i32
    %2 = arith.cmpi ne, %1, %c0_i32_0 : i32
    scf.if %2 {
      %cst_9 = arith.constant 0.000000e+00 : f32
      %11 = vector.broadcast %cst_9 : f32 to vector<2x32xf32>
      %c0_10 = arith.constant 0 : index
      %c0_11 = arith.constant 0 : index
      %12 = vector.load %arg6[%c0_10, %c0_11] : memref<2x32xf32, #tpu.memory_space<vmem>>, vector<2x32xf32>
      tpu.vector_store %arg6[%c0_10, %c0_11], %11 {strides = array<i32>} : memref<2x32xf32, #tpu.memory_space<vmem>>, vector<2x32xf32>,
    } else {
    }
    %c0 = arith.constant 0 : index
    %c0_1 = arith.constant 0 : index
    %3 = vector.load %arg6[%c0, %c0_1] : memref<2x32xf32, #tpu.memory_space<vmem>>, vector<2x32xf32>
    %c0_2 = arith.constant 0 : index
    %c0_3 = arith.constant 0 : index
    %c0_4 = arith.constant 0 : index
    %4 = vector.load %arg2[%c0_2, %c0_3, %c0_4] : memref<2x8x32xf32, #tpu.memory_space<vmem>>, vector<2x8x32xf32>
    %cst = arith.constant dense<0.000000e+00> : vector<2x32xf32>
    %5 = vector.multi_reduction <add>, %4, %cst [1] : vector<2x8x32xf32> to vector<2x32xf32>
    %6 = arith.addf %3, %5 : vector<2x32xf32>
    %c0_5 = arith.constant 0 : index
    %c0_6 = arith.constant 0 : index
    %7 = vector.load %arg6[%c0_5, %c0_6] : memref<2x32xf32, #tpu.memory_space<vmem>>, vector<2x32xf32>
    tpu.vector_store %arg6[%c0_5, %c0_6], %6 {strides = array<i32>} : memref<2x32xf32, #tpu.memory_space<vmem>>, vector<2x32xf32>,
    %c0_i32_7 = arith.constant 0 : i32
    %8 = arith.cmpi eq, %arg1, %c0_i32_7 : i32
    %9 = arith.extui %8 : i1 to i32
    %c0_i32_8 = arith.constant 0 : i32
    %10 = arith.cmpi ne, %9, %c0_i32_8 : i32
    scf.if %10 {
      %c0_9 = arith.constant 0 : index
      %c0_10 = arith.constant 0 : index
      %11 = vector.load %arg6[%c0_9, %c0_10] : memref<2x32xf32, #tpu.memory_space<vmem>>, vector<2x32xf32>
      %cst_11 = arith.constant 1.250000e-01 : f32
      %12 = vector.broadcast %cst_11 : f32 to vector<2x32xf32>
      %13 = arith.mulf %11, %12 : vector<2x32xf32>
      %c0_12 = arith.constant 0 : index
      %c0_13 = arith.constant 0 : index
      %14 = vector.load %arg3[%c0_12, %c0_13] : memref<32x128xf32, #tpu.memory_space<vmem>>, vector<32x128xf32>
      %cst_14 = arith.constant dense<0.000000e+00> : vector<2x128xf32>
      %15 = tpu.matmul %13, %14, %cst_14 {dimension_numbers = #tpu.dot_dimension_numbers<[1], [0], [0], [1], [0, 0, 1, 1], [], []>} : vector<2x32xf32>, vector<32x128xf32>, vector<2x128xf32> -> vector<2x128xf32>
      %c0_15 = arith.constant 0 : index
      %c0_16 = arith.constant 0 : index
      %16 = vector.load %arg4[%c0_15, %c0_16] : memref<1x128xf32, #tpu.memory_space<vmem>>, vector<1x128xf32>
      %17 = vector.broadcast %16 : vector<1x128xf32> to vector<2x128xf32>
      %18 = arith.addf %15, %17 : vector<2x128xf32>
      %c0_17 = arith.constant 0 : index
      %c0_18 = arith.constant 0 : index
      %19 = vector.load %arg5[%c0_17, %c0_18] : memref<2x128xf32, #tpu.memory_space<vmem>>, vector<2x128xf32>
      tpu.vector_store %arg5[%c0_17, %c0_18], %18 {strides = array<i32>} : memref<2x128xf32, #tpu.memory_space<vmem>>, vector<2x128xf32>,
    } else {
    }
    return
  }
  func.func @transform_0(%arg0: i32, %arg1: i32) -> (i32, i32, i32) {
    %c0_i32 = arith.constant 0 : i32
    %c0_i32_0 = arith.constant 0 : i32
    return %arg0, %arg1, %c0_i32 : i32, i32, i32
  }
  func.func @transform_1(%arg0: i32, %arg1: i32) -> (i32, i32) {
    %c0_i32 = arith.constant 0 : i32
    %c0_i32_0 = arith.constant 0 : i32
    %c0_i32_1 = arith.constant 0 : i32
    return %c0_i32, %c0_i32_0 : i32, i32
  }
  func.func @transform_2(%arg0: i32, %arg1: i32) -> (i32, i32) {
    %c0_i32 = arith.constant 0 : i32
    %c0_i32_0 = arith.constant 0 : i32
    %c0_i32_1 = arith.constant 0 : i32
    return %c0_i32, %c0_i32_0 : i32, i32
  }
  func.func @transform_3(%arg0: i32, %arg1: i32) -> (i32, i32) {
    %c0_i32 = arith.constant 0 : i32
    %c0_i32_0 = arith.constant 0 : i32
    return %arg0, %c0_i32 : i32, i32
  }
}

</mosaic_0001>

<bundles_post_ra>
// kernel: _protclip_forward.3
= control target key start
LH: loop header
LB: loop body
LE: loop exit
PB: predicated region body
PF: predicated region fallthrough
CT: control target
= control target key end

     0   :  { %vm19_vm0 = vcmask 254976   ;;  %v203_v3 = vmov 0.0|0.0   ;;  %v204_v6 = vmov 0.0   ;;  %vm24_vm1 = vcmask 261120   ;;  %s265_s0 = inlined_call_operand.vmem [shape: f32[2,8,32], index: 0, kind: input, shape index: {}]   ;;  %s266_s1 = inlined_call_operand.vmem [shape: f32[32,128], index: 1, kind: input, shape index: {}]   ;;  %s267_s2 = inlined_call_operand.vmem [shape: f32[1,128], index: 2, kind: input, shape index: {}]   ;;  %s268_s3 = inlined_call_operand.hbm [shape: f32[2,128], index: 3, kind: output, shape index: {}]  }
   0x1   :  { %v52_v0 = vld [vmem:[%s266_s1] sm:$0xff]  ;;  %v53_v1 = vld [vmem:[%s266_s1 + $0x8] sm:$0xff]  ;;  %v54_v2 = vld [vmem:[%s266_s1 + $0x10] sm:$0xff]  ;;  %169 = vmatprep.subr.bf16.mxu0 %v203_v3  ;;  %20 = vst.msk [vmem:[#allocation2] sm:$0x3] %vm19_vm0, %v204_v6  ;;  %vm205_vm2 = vmmov 0  }
   0x2   :  { %v170_v4 = vpack.c.bf16 %v53_v1, %v52_v0  ;;  %v55_v5 = vld [vmem:[%s266_s1 + $0x18] sm:$0xff]  ;;  %v22_v7 = vld [vmem:[%s265_s0] sm:$0xff]  ;;  %v23_v8 = vld [vmem:[%s265_s0 + $0x8] sm:$0xff]  ;;  %166 = vmatprep.mubr.msk.f32.mxu0 %vm205_vm2, %v204_v6 }
   0x3   :  { %v25_v9 = vsel %vm24_vm1, %v22_v7, 0.0  ;;  %v32_v10 = vsel %vm24_vm1, %v23_v8, 0.0 }
   0x4   :  { %8 = vsyncpa [#allocation4], 0  ;;  %171 = vmatpush3.bf16.msra.mxu0 %v170_v4  ;;  %v173_v11 = vpack.c.bf16 %v55_v5, %v54_v2  ;;  %v26_v12 = vrot.slane %v25_v9, 4  ;;  %v33_v13 = vrot.slane %v32_v10, 4  ;;  %vm41_vm3 = vcmask 1041409   ;;  %s206_s24 = smov [#allocation3]  }
   0x5   :  { %172 = vmatprep.subr.bf16.mxu0 %v203_v3  ;;  %v151_v29 = vld [vmem:[%s267_s2] ss:$0 sm:$0xff]  ;;  %s143_s25 = sshll.u32 %s206_s24, 4  ;;  %s144_s25 = int_to_ptr.vmem [resolvable:$true] %s143_s25 }
   0x6   :  { %v27_v14 = vadd.f32 %v26_v12, %v25_v9  ;;  %v34_v15 = vadd.f32 %v33_v13, %v32_v10  ;;  %s179_s26 = scalar_lea.vmem %s144_s25, 32  ;;  %p184_p1 = scmp.lt.s32.totalorder %s144_s25, %s144_s25 }
   0x7   :  { %p180_p0 = scmp.ne.s32.totalorder %s144_s25, %s179_s26  ;;  %p185_p2 = scmp.lt.s32.totalorder %s179_s26, %s179_s26 }
   0x8   :  { %174 = vmatpush3.bf16.msra.mxu0 %v173_v11  ;;  %v28_v16 = vrot.slane %v27_v14, 2  ;;  %v35_v17 = vrot.slane %v34_v15, 2  ;;  %v21_v22 = vld [vmem:[#allocation2] sm:$0x3] }
   0x9   :  { %p186_p3 = por %p185_p2, %p184_p1 }
   0xa   :  { %v29_v18 = vadd.f32 %v28_v16, %v27_v14  ;;  %v36_v19 = vadd.f32 %v35_v17, %v34_v15 }
   0xb   :  { %p187_p4 = pnand %p186_p3, %p180_p0 }
   0xc   :  { %v30_v20 = vrot.slane %v29_v18, 1  ;;  %v37_v21 = vrot.slane %v36_v19, 1 }
   0xe   :  { %v31_v23 = vadd.f32 %v30_v20, %v29_v18  ;;  %v38_v24 = vadd.f32 %v37_v21, %v36_v19 }
  0x10   :  { %v42_v25 = vsel %vm41_vm3, %v38_v24, %v31_v23 }
  0x11   :  { %v44_v26 = vadd.f32 %v42_v25, %v21_v22 }
  0x13   :  { %46 = vst.msk [vmem:[#allocation2] sm:$0x3] %vm19_vm0, %v44_v26 }
  0x1a   :  { %v50_v27 = vld [vmem:[#allocation2] sm:$0x3] }
  0x1b   :  { %v51_v28 = vmul.f32 0.125, %v50_v27 }
  0x1d   :  { %167 = vmatmul.mubr.msk.f32.vlgmr.msra.gmra.mrb[0].mxu0 %vm24_vm1, %v51_v28 }
  0xf0   :  { %v132_v30 = vpop.f32.mrb[0].mxu0 }
  0xf1   :  { %v133_v31 = vadd.f32 %v151_v29, %v132_v30  ;;  %v168_v32 = vpop.f32.mrb[1].mxu0 }
  0xf3   :  { %136 = vst [vmem:[#allocation3] sm:$0x3] %v133_v31 }
  0xf4   :  { %190 = shalt.err (!%p187_p4)
}
  0xf5   :  { %s191_s29 = scalar_lea.hbm %s268_s3, 32 }
  0xf6   :  { %p192_p5 = scmp.ne.s32.totalorder %s268_s3, %s191_s29  ;;  %p195_p6 = scmp.lt.u32.totalorder %s191_s29, %s268_s3 }
  0xf8   :  { %p197_p7 = pnand %p195_p6, %p192_p5 }
  0xfa   :  { %200 = shalt.err (!%p197_p7)
}
  0xfb   :  { %146 = dma.vmem_to_hbm [thread:$0]  %s144_s25, 32, %s268_s3, [#allocation4]  }
  0xfc   :  { %201 = dma.done.wait [#allocation4], 32  }
  0xfd   :  { %202 = vsyncadd [#allocation4], 4294967264 }
  0xfe   :  { %150 = vsyncpa [#allocation4], 1 }

// kernel: _protclip_forward.2
= control target key start
LH: loop header
LB: loop body
LE: loop exit
PB: predicated region body
PF: predicated region fallthrough
CT: control target
= control target key end

     0   :  { %vm18_vm0 = vcmask 254976   ;;  %v167_v0 = vmov 0.0|0.0   ;;  %v168_v4 = vmov 0.0   ;;  %vm169_vm1 = vmmov 0   ;;  %s219_s1 = inlined_call_operand.vmem [shape: f32[32,128], index: 1, kind: input, shape index: {}]   ;;  %s220_s0 = inlined_call_operand.vmem [shape: f32[2,8,32], index: 0, kind: input, shape index: {}]   ;;  %s221_s2 = inlined_call_operand.vmem [shape: f32[1,128], index: 2, kind: input, shape index: {}]   ;;  %s222_s3 = inlined_call_operand.vmem [shape: f32[2,128], index: 3, kind: output, shape index: {}]  }
   0x1   :  { %158 = vmatprep.subr.bf16.mxu0 %v167_v0  ;;  %v51_v1 = vld [vmem:[%s219_s1] sm:$0xff]  ;;  %v52_v2 = vld [vmem:[%s219_s1 + $0x8] sm:$0xff]  ;;  %v53_v3 = vld [vmem:[%s219_s1 + $0x10] sm:$0xff]  ;;  %19 = vst.msk [vmem:[#allocation2] sm:$0x3] %vm18_vm0, %v168_v4  ;;  %155 = vmatprep.mubr.msk.f32.mxu0 %vm169_vm1, %v168_v4  ;;  %vm23_vm2 = vcmask 261120  }
   0x2   :  { %v159_v5 = vpack.c.bf16 %v52_v2, %v51_v1  ;;  %v54_v6 = vld [vmem:[%s219_s1 + $0x18] sm:$0xff]  ;;  %v21_v7 = vld [vmem:[%s220_s0] sm:$0xff]  ;;  %v22_v8 = vld [vmem:[%s220_s0 + $0x8] sm:$0xff]  ;;  %vm40_vm3 = vcmask 1041409  }
   0x3   :  { %v24_v9 = vsel %vm23_vm2, %v21_v7, 0.0  ;;  %v31_v10 = vsel %vm23_vm2, %v22_v8, 0.0  ;;  %v162_v11 = vpack.c.bf16 %v54_v6, %v53_v3  ;;  %v140_v29 = vld [vmem:[%s221_s2] ss:$0 sm:$0xff] }
   0x4   :  { %160 = vmatpush3.bf16.msra.mxu0 %v159_v5  ;;  %v25_v12 = vrot.slane %v24_v9, 4  ;;  %v32_v13 = vrot.slane %v31_v10, 4 }
   0x5   :  { %161 = vmatprep.subr.bf16.mxu0 %v167_v0 }
   0x6   :  { %v26_v14 = vadd.f32 %v25_v12, %v24_v9  ;;  %v33_v15 = vadd.f32 %v32_v13, %v31_v10 }
   0x8   :  { %163 = vmatpush3.bf16.msra.mxu0 %v162_v11  ;;  %v27_v16 = vrot.slane %v26_v14, 2  ;;  %v34_v17 = vrot.slane %v33_v15, 2  ;;  %v20_v22 = vld [vmem:[#allocation2] sm:$0x3] }
   0xa   :  { %v28_v18 = vadd.f32 %v27_v16, %v26_v14  ;;  %v35_v19 = vadd.f32 %v34_v17, %v33_v15 }
   0xc   :  { %v29_v20 = vrot.slane %v28_v18, 1  ;;  %v36_v21 = vrot.slane %v35_v19, 1 }
   0xe   :  { %v30_v23 = vadd.f32 %v29_v20, %v28_v18  ;;  %v37_v24 = vadd.f32 %v36_v21, %v35_v19 }
  0x10   :  { %v41_v25 = vsel %vm40_vm3, %v37_v24, %v30_v23 }
  0x11   :  { %v43_v26 = vadd.f32 %v41_v25, %v20_v22 }
  0x13   :  { %45 = vst.msk [vmem:[#allocation2] sm:$0x3] %vm18_vm0, %v43_v26 }
  0x1a   :  { %v49_v27 = vld [vmem:[#allocation2] sm:$0x3] }
  0x1b   :  { %v50_v28 = vmul.f32 0.125, %v49_v27 }
  0x1d   :  { %156 = vmatmul.mubr.msk.f32.vlgmr.msra.gmra.mrb[0].mxu0 %vm23_vm2, %v50_v28 }
  0xf0   :  { %v131_v30 = vpop.f32.mrb[0].mxu0 }
  0xf1   :  { %v132_v31 = vadd.f32 %v140_v29, %v131_v30  ;;  %v157_v32 = vpop.f32.mrb[1].mxu0 }
  0xf3   :  { %135 = vst [vmem:[%s222_s3] sm:$0x3] %v132_v31 }

</bundles_post_ra>
